<compile_context>
chip_gen: v7x
topology: tpu7x:2x2x1
jax: 0.10.0
libtpu: 0.0.40
codegen_flags: <defaults>
</compile_context>

<pallas_src>
import functools

import jax
import jax.numpy as jnp
from jax.experimental import pallas as pl
from jax.experimental.pallas import tpu as pltpu


def _detect_lane_target():
    """256-lane packing on v6e/v7x (2x256x256 MXU), 128 elsewhere (v5e)."""
    try:
        kind = jax.devices()[0].device_kind.lower()
    except Exception:
        return 128
    if ("v6" in kind) or ("v7" in kind):
        return 256
    return 128


def prepare_fc_params(gamma, beta, w1, b1, w2, b2, *, lane_target=None):
    """Build lane-packed, block-diagonal parameters ONCE (hoisted out of the
    per-call wrapper).

    w1: (embed_dim, hidden), w2: (hidden, embed_dim)  (= PyTorch weight.T).
    Returns a dict consumed by fully_connected_output().
    """
    embed_dim, hidden = w1.shape
    if lane_target is None:
        lane_target = _detect_lane_target()

    if embed_dim <= lane_target and lane_target % embed_dim == 0:
        pack = lane_target // embed_dim
    elif embed_dim <= 128 and 128 % embed_dim == 0:
        pack = 128 // embed_dim
    else:
        pack = 1                           # fallback: already lane-dense / odd size

    W = pack * embed_dim                   # packed activation lane width
    HP = pack * hidden                     # packed hidden lane width

    # Fold LayerNorm affine into the first Linear:
    #   (xn*gamma + beta) @ w1 + b1 == xn @ (gamma[:,None]*w1) + (beta@w1 + b1)
    gamma = gamma.astype(jnp.float32)
    beta = beta.astype(jnp.float32)
    w1f = w1.astype(jnp.float32)
    w1_eff = gamma[:, None] * w1f                                 # (D, H)
    b1_eff = beta @ w1f + b1.astype(jnp.float32)                  # (H,)

    eye_p = jnp.eye(pack, dtype=jnp.float32)
    w1b = jnp.kron(eye_p, w1_eff).astype(jnp.bfloat16)            # (W, HP)  bf16
    w2b = jnp.kron(eye_p, w2.astype(jnp.float32)).astype(jnp.bfloat16)  # (HP, W)
    mavg = jnp.kron(eye_p, jnp.full((embed_dim, embed_dim),
                                    1.0 / embed_dim, jnp.float32))       # (W, W) f32
    b1_t = jnp.tile(b1_eff.reshape(1, hidden), (1, pack))          # (1, HP) f32
    b2_t = jnp.tile(b2.astype(jnp.float32).reshape(1, embed_dim), (1, pack))  # (1, W)

    return dict(pack=pack, embed_dim=embed_dim, hidden=hidden, W=W, HP=HP,
                mavg=mavg, w1b=w1b, b1=b1_t, w2b=w2b, b2=b2_t)


def _fc_output_kernel(xp_ref, mavg_ref, w1_ref, b1_ref, w2_ref, b2_ref, o_ref,
                      *, eps: float, slope: float):
    """Fused LayerNorm -> Linear -> LeakyReLU -> Linear -> LeakyReLU on a
    lane-packed (tile, W) slab with block-diagonal weights."""
    x = xp_ref[...].astype(jnp.float32)                            # (T, W)

    # LayerNorm statistics per embed_dim segment: reduce + broadcast on the
    # MXU via the block-diagonal averaging matrix (f32 for accuracy).
    mavg = mavg_ref[...]
    mean = jnp.dot(x, mavg, preferred_element_type=jnp.float32)
    centered = x - mean
    var = jnp.dot(centered * centered, mavg, preferred_element_type=jnp.float32)
    xn = centered * jax.lax.rsqrt(var + eps)       # gamma/beta folded into w1/b1

    # Linear(D -> 32) + LeakyReLU(0.2); bf16 MXU operands, f32 accumulation.
    h = jnp.dot(xn.astype(jnp.bfloat16), w1_ref[...],
                preferred_element_type=jnp.float32) + b1_ref[...]
    h = jnp.where(h >= 0, h, slope * h)

    # TODO(synk): training-mode Dropout(p=0.1) (pltpu.prng_random_bits mask)
    # not implemented; inference path is identity.

    # Linear(32 -> D) + LeakyReLU(0.2)
    y = jnp.dot(h.astype(jnp.bfloat16), w2_ref[...],
                preferred_element_type=jnp.float32) + b2_ref[...]
    y = jnp.where(y >= 0, y, slope * y)

    o_ref[...] = y.astype(o_ref.dtype)


def fully_connected_output(x, params, *, eps=1e-5, slope=0.2, tile_rows=2048,
                           vmem_limit_bytes=32 * 1024 * 1024):
    """x: (batch, seq, embed_dim).  Returns same shape/dtype.

    tile_rows is in *packed* rows (each packed row holds `pack` original rows).
    """
    batch, seq, embed_dim = x.shape
    assert embed_dim == params["embed_dim"], "params built for a different embed_dim"
    pack, W, HP = params["pack"], params["W"], params["HP"]

    n_rows = batch * seq
    packed_rows = pl.cdiv(n_rows, pack)
    pad_rows = packed_rows * pack - n_rows          # <= pack-1

    x2d = x.reshape(n_rows, embed_dim)
    if pad_rows:
        # Pad only up to a multiple of pack; the grid handles a ragged last
        # block, so no padding to a full tile multiple (and no extra HBM copy
        # for tile-multiple inputs).
        x2d = jnp.pad(x2d, ((0, pad_rows), (0, 0)))
    xp = x2d.reshape(packed_rows, W)                # contiguous -> free reshape

    # ---- tile selection under a corrected VMEM budget (v7x-safe default) ----
    f32b = 4
    param_bytes = (W * W * f32b                 # mavg (f32)
                   + W * HP * 2 + HP * W * 2    # w1b / w2b (bf16)
                   + HP * f32b + W * f32b)      # biases
    # Per packed row: double-buffered in + out blocks (2*2) plus ~7x f32
    # in-kernel temporaries (x, mean, centered, var, xn, h, y).
    per_row_bytes = (2 * 2 + 7) * W * f32b
    budget = vmem_limit_bytes - 2 * param_bytes - (4 << 20)    # 4 MiB headroom
    tile_cap = max(8, (budget // per_row_bytes) // 8 * 8)

    tile = max(8, (min(tile_rows, tile_cap) // 8) * 8)
    if packed_rows <= tile:
        if packed_rows >= 16:
            # Keep >=2 sublane-aligned grid steps so the BlockSpec pipeline
            # has work to overlap and both v7x TensorCores get a share.
            tile = min(tile, pl.cdiv(pl.cdiv(packed_rows, 2), 8) * 8)
        else:
            tile = packed_rows                      # tiny input: one full block
    grid = (pl.cdiv(packed_rows, tile),)

    approx_vmem = (2 * 2 + 7) * tile * W * f32b + 2 * param_bytes
    assert approx_vmem <= vmem_limit_bytes, (
        f"tile={tile} needs ~{approx_vmem} B VMEM > {vmem_limit_bytes}; "
        "lower tile_rows or raise vmem_limit_bytes")

    kernel = functools.partial(_fc_output_kernel, eps=eps, slope=slope)

    out_packed = pl.pallas_call(
        kernel,
        out_shape=jax.ShapeDtypeStruct((packed_rows, W), x.dtype),
        grid_spec=pltpu.PrefetchScalarGridSpec(
            num_scalar_prefetch=0,
            grid=grid,
            in_specs=[
                pl.BlockSpec((tile, W), lambda i: (i, 0)),    # packed activations
                pl.BlockSpec((W, W), lambda i: (0, 0)),       # LN averaging matrix (f32)
                pl.BlockSpec((W, HP), lambda i: (0, 0)),      # w1 block-diag (bf16)
                pl.BlockSpec((1, HP), lambda i: (0, 0)),      # b1 (gamma/beta folded)
                pl.BlockSpec((HP, W), lambda i: (0, 0)),      # w2 block-diag (bf16)
                pl.BlockSpec((1, W), lambda i: (0, 0)),       # b2
            ],
            out_specs=pl.BlockSpec((tile, W), lambda i: (i, 0)),
        ),
        compiler_params=pltpu.CompilerParams(
            dimension_semantics=("parallel",),
            vmem_limit_bytes=vmem_limit_bytes),
    )(xp, params["mavg"], params["w1b"], params["b1"], params["w2b"], params["b2"])

    out2d = out_packed.reshape(packed_rows * pack, embed_dim)
    if pad_rows:
        out2d = out2d[:n_rows]                      # slice only when we padded
    return out2d.reshape(batch, seq, embed_dim)


def _reference(x, gamma, beta, w1, b1, w2, b2, eps=1e-5, slope=0.2):
    mean = jnp.mean(x, axis=-1, keepdims=True)
    var = jnp.mean((x - mean) ** 2, axis=-1, keepdims=True)
    xn = (x - mean) / jnp.sqrt(var + eps) * gamma + beta
    h = xn @ w1 + b1
    h = jnp.where(h >= 0, h, slope * h)
    y = h @ w2 + b2
    y = jnp.where(y >= 0, y, slope * y)
    return y


if __name__ == "__main__":
    embed_dim, hidden = 32, 32

    key = jax.random.PRNGKey(0)
    kx, kw1, kb1, kw2, kb2, kg, kbt, kx2, kx3 = jax.random.split(key, 9)

    # LayerNorm affine params (PyTorch default is gamma=1/beta=0; randomize to
    # actually exercise the gamma/beta -> w1/b1 fold).
    gamma = 1.0 + 0.2 * jax.random.normal(kg, (embed_dim,), jnp.float32)
    beta = 0.1 * jax.random.normal(kbt, (embed_dim,), jnp.float32)

    # Linear weights stored as (in_features, out_features)  (= PyTorch weight.T).
    lim1 = 1.0 / jnp.sqrt(embed_dim)
    w1 = jax.random.uniform(kw1, (embed_dim, hidden), jnp.float32, -lim1, lim1)
    b1 = jax.random.uniform(kb1, (hidden,), jnp.float32, -lim1, lim1)
    lim2 = 1.0 / jnp.sqrt(hidden)
    w2 = jax.random.uniform(kw2, (hidden, embed_dim), jnp.float32, -lim2, lim2)
    b2 = jax.random.uniform(kb2, (embed_dim,), jnp.float32, -lim2, lim2)

    # Block-diagonal / lane-packed params built ONCE.
    params = prepare_fc_params(gamma, beta, w1, b1, w2, b2)

    # bf16 linear operands => looser tolerance than pure-f32 (LN stats stay f32).
    ATOL = 2e-2
    RTOL = 2e-2

    # --- small test (batch=2, seq=8): single full-extent packed block ---
    x = jax.random.normal(kx, (2, 8, embed_dim), dtype=jnp.float32)
    out = jax.block_until_ready(fully_connected_output(x, params))
    ref = _reference(x, gamma, beta, w1, b1, w2, b2)
    assert out.shape == x.shape and out.dtype == x.dtype
    assert jnp.allclose(out, ref, atol=ATOL, rtol=RTOL), "mismatch vs reference (small)"

    # --- medium test (batch=4, seq=128): default tile_rows, grid split into
    #     >=2 parallel steps (v7x two-TC path) ---
    x2 = jax.random.normal(kx2, (4, 128, embed_dim), dtype=jnp.float32)
    out2 = jax.block_until_ready(fully_connected_output(x2, params))
    ref2 = _reference(x2, gamma, beta, w1, b1, w2, b2)
    assert out2.shape == x2.shape
    assert jnp.allclose(out2, ref2, atol=ATOL, rtol=RTOL), "mismatch vs reference (medium)"

    # --- ragged test (batch=3, seq=37) with small tile_rows to exercise a
    #     multi-step grid, the ragged last block, and the pack-padding path ---
    x3 = jax.random.normal(kx3, (3, 37, embed_dim), dtype=jnp.float32)
    out3 = jax.block_until_ready(fully_connected_output(x3, params, tile_rows=8))
    ref3 = _reference(x3, gamma, beta, w1, b1, w2, b2)
    assert out3.shape == x3.shape
    assert jnp.allclose(out3, ref3, atol=ATOL, rtol=RTOL), "mismatch vs reference (ragged)"

    print("KERNEL_OK")
</pallas_src>

<mosaic_0001>
module attributes {stable_mosaic.version = 11 : i64} {
  func.func @_fc_output_kernel(%arg0: i32, %arg1: memref<4x128xf32, #tpu.memory_space<vmem>>, %arg2: memref<128x128xf32, #tpu.memory_space<vmem>>, %arg3: memref<128x128xbf16, #tpu.memory_space<vmem>>, %arg4: memref<1x128xf32, #tpu.memory_space<vmem>>, %arg5: memref<128x128xbf16, #tpu.memory_space<vmem>>, %arg6: memref<1x128xf32, #tpu.memory_space<vmem>>, %arg7: memref<4x128xf32, #tpu.memory_space<vmem>>) attributes {dimension_semantics = [#tpu.dimension_semantics<parallel>], iteration_bounds = array<i64: 1>, scalar_prefetch = 0 : i64, scratch_operands = 0 : i64, tpu.core_type = #tpu.core_type<tc>, window_params = [{transform_indices = @transform_0, window_bounds = array<i64: 4, 128>}, {pipeline_mode = #tpu.pipeline_mode<synchronous>, transform_indices = @transform_1, window_bounds = array<i64: 128, 128>}, {pipeline_mode = #tpu.pipeline_mode<synchronous>, transform_indices = @transform_2, window_bounds = array<i64: 128, 128>}, {pipeline_mode = #tpu.pipeline_mode<synchronous>, transform_indices = @transform_3, window_bounds = array<i64: 1, 128>}, {pipeline_mode = #tpu.pipeline_mode<synchronous>, transform_indices = @transform_4, window_bounds = array<i64: 128, 128>}, {pipeline_mode = #tpu.pipeline_mode<synchronous>, transform_indices = @transform_5, window_bounds = array<i64: 1, 128>}, {transform_indices = @transform_6, window_bounds = array<i64: 4, 128>}]} {
    %c0 = arith.constant 0 : index
    %c0_0 = arith.constant 0 : index
    %0 = vector.load %arg1[%c0, %c0_0] : memref<4x128xf32, #tpu.memory_space<vmem>>, vector<4x128xf32>
    %c0_1 = arith.constant 0 : index
    %c0_2 = arith.constant 0 : index
    %1 = vector.load %arg2[%c0_1, %c0_2] : memref<128x128xf32, #tpu.memory_space<vmem>>, vector<128x128xf32>
    %cst = arith.constant dense<0.000000e+00> : vector<4x128xf32>
    %2 = tpu.matmul %0, %1, %cst {dimension_numbers = #tpu.dot_dimension_numbers<[1], [0], [0], [1], [0, 0, 1, 1], [], []>} : vector<4x128xf32>, vector<128x128xf32>, vector<4x128xf32> -> vector<4x128xf32>
    %3 = arith.subf %0, %2 : vector<4x128xf32>
    %4 = arith.mulf %3, %3 : vector<4x128xf32>
    %cst_3 = arith.constant dense<0.000000e+00> : vector<4x128xf32>
    %5 = tpu.matmul %4, %1, %cst_3 {dimension_numbers = #tpu.dot_dimension_numbers<[1], [0], [0], [1], [0, 0, 1, 1], [], []>} : vector<4x128xf32>, vector<128x128xf32>, vector<4x128xf32> -> vector<4x128xf32>
    %cst_4 = arith.constant 9.99999974E-6 : f32
    %6 = vector.broadcast %cst_4 : f32 to vector<4x128xf32>
    %7 = arith.addf %5, %6 : vector<4x128xf32>
    %8 = math.rsqrt %7 : vector<4x128xf32>
    %9 = arith.mulf %3, %8 : vector<4x128xf32>
    %10 = arith.truncf %9 : vector<4x128xf32> to vector<4x128xbf16>
    %c0_5 = arith.constant 0 : index
    %c0_6 = arith.constant 0 : index
    %11 = vector.load %arg3[%c0_5, %c0_6] : memref<128x128xbf16, #tpu.memory_space<vmem>>, vector<128x128xbf16>
    %cst_7 = arith.constant dense<0.000000e+00> : vector<4x128xf32>
    %12 = tpu.matmul %10, %11, %cst_7 {dimension_numbers = #tpu.dot_dimension_numbers<[1], [0], [0], [1], [0, 0, 1, 1], [], []>} : vector<4x128xbf16>, vector<128x128xbf16>, vector<4x128xf32> -> vector<4x128xf32>
    %c0_8 = arith.constant 0 : index
    %c0_9 = arith.constant 0 : index
    %13 = vector.load %arg4[%c0_8, %c0_9] : memref<1x128xf32, #tpu.memory_space<vmem>>, vector<1x128xf32>
    %14 = vector.broadcast %13 : vector<1x128xf32> to vector<4x128xf32>
    %15 = arith.addf %12, %14 : vector<4x128xf32>
    %cst_10 = arith.constant 0.000000e+00 : f32
    %16 = vector.broadcast %cst_10 : f32 to vector<4x128xf32>
    %17 = arith.cmpf oge, %15, %16 : vector<4x128xf32>
    %cst_11 = arith.constant 2.000000e-01 : f32
    %18 = vector.broadcast %cst_11 : f32 to vector<4x128xf32>
    %19 = arith.mulf %18, %15 : vector<4x128xf32>
    %20 = arith.select %17, %15, %19 : vector<4x128xi1>, vector<4x128xf32>
    %21 = arith.truncf %20 : vector<4x128xf32> to vector<4x128xbf16>
    %c0_12 = arith.constant 0 : index
    %c0_13 = arith.constant 0 : index
    %22 = vector.load %arg5[%c0_12, %c0_13] : memref<128x128xbf16, #tpu.memory_space<vmem>>, vector<128x128xbf16>
    %cst_14 = arith.constant dense<0.000000e+00> : vector<4x128xf32>
    %23 = tpu.matmul %21, %22, %cst_14 {dimension_numbers = #tpu.dot_dimension_numbers<[1], [0], [0], [1], [0, 0, 1, 1], [], []>} : vector<4x128xbf16>, vector<128x128xbf16>, vector<4x128xf32> -> vector<4x128xf32>
    %c0_15 = arith.constant 0 : index
    %c0_16 = arith.constant 0 : index
    %24 = vector.load %arg6[%c0_15, %c0_16] : memref<1x128xf32, #tpu.memory_space<vmem>>, vector<1x128xf32>
    %25 = vector.broadcast %24 : vector<1x128xf32> to vector<4x128xf32>
    %26 = arith.addf %23, %25 : vector<4x128xf32>
    %cst_17 = arith.constant 0.000000e+00 : f32
    %27 = vector.broadcast %cst_17 : f32 to vector<4x128xf32>
    %28 = arith.cmpf oge, %26, %27 : vector<4x128xf32>
    %cst_18 = arith.constant 2.000000e-01 : f32
    %29 = vector.broadcast %cst_18 : f32 to vector<4x128xf32>
    %30 = arith.mulf %29, %26 : vector<4x128xf32>
    %31 = arith.select %28, %26, %30 : vector<4x128xi1>, vector<4x128xf32>
    %c0_19 = arith.constant 0 : index
    %c0_20 = arith.constant 0 : index
    %32 = vector.load %arg7[%c0_19, %c0_20] : memref<4x128xf32, #tpu.memory_space<vmem>>, vector<4x128xf32>
    tpu.vector_store %arg7[%c0_19, %c0_20], %31 {strides = array<i32>} : memref<4x128xf32, #tpu.memory_space<vmem>>, vector<4x128xf32>,
    return
  }
  func.func @transform_0(%arg0: i32) -> (i32, i32) {
    %c0_i32 = arith.constant 0 : i32
    %c0_i32_0 = arith.constant 0 : i32
    return %arg0, %c0_i32 : i32, i32
  }
  func.func @transform_1(%arg0: i32) -> (i32, i32) {
    %c0_i32 = arith.constant 0 : i32
    %c0_i32_0 = arith.constant 0 : i32
    %c0_i32_1 = arith.constant 0 : i32
    return %c0_i32, %c0_i32_0 : i32, i32
  }
  func.func @transform_2(%arg0: i32) -> (i32, i32) {
    %c0_i32 = arith.constant 0 : i32
    %c0_i32_0 = arith.constant 0 : i32
    %c0_i32_1 = arith.constant 0 : i32
    return %c0_i32, %c0_i32_0 : i32, i32
  }
  func.func @transform_3(%arg0: i32) -> (i32, i32) {
    %c0_i32 = arith.constant 0 : i32
    %c0_i32_0 = arith.constant 0 : i32
    %c0_i32_1 = arith.constant 0 : i32
    return %c0_i32, %c0_i32_0 : i32, i32
  }
  func.func @transform_4(%arg0: i32) -> (i32, i32) {
    %c0_i32 = arith.constant 0 : i32
    %c0_i32_0 = arith.constant 0 : i32
    %c0_i32_1 = arith.constant 0 : i32
    return %c0_i32, %c0_i32_0 : i32, i32
  }
  func.func @transform_5(%arg0: i32) -> (i32, i32) {
    %c0_i32 = arith.constant 0 : i32
    %c0_i32_0 = arith.constant 0 : i32
    %c0_i32_1 = arith.constant 0 : i32
    return %c0_i32, %c0_i32_0 : i32, i32
  }
  func.func @transform_6(%arg0: i32) -> (i32, i32) {
    %c0_i32 = arith.constant 0 : i32
    %c0_i32_0 = arith.constant 0 : i32
    return %arg0, %c0_i32 : i32, i32
  }
}

</mosaic_0001>

<bundles_post_ra>
// kernel: tpu_custom_call.1
= control target key start
LH: loop header
LB: loop body
LE: loop exit
PB: predicated region body
PF: predicated region fallthrough
CT: control target
= control target key end

     0   :  { %11 = vsyncpa [#allocation3], 0  ;;  %s1000_s0 = inlined_call_operand.hbm [shape: f32[4,128], index: 0, kind: input, shape index: {}]   ;;  %s1001_s1 = inlined_call_operand.hbm [shape: f32[128,128], index: 1, kind: input, shape index: {}]   ;;  %s1002_s2 = inlined_call_operand.hbm [shape: bf16[128,128], index: 2, kind: input, shape index: {}]   ;;  %s1003_s3 = inlined_call_operand.vmem [shape: f32[1,128], index: 3, kind: input, shape index: {}]   ;;  %s1004_s4 = inlined_call_operand.hbm [shape: bf16[128,128], index: 4, kind: input, shape index: {}]   ;;  %s1005_s5 = inlined_call_operand.vmem [shape: f32[1,128], index: 5, kind: input, shape index: {}]   ;;  %s1006_s6 = inlined_call_operand.hbm [shape: f32[4,128], index: 6, kind: output, shape index: {}]  }
   0x1   :  { %12 = vsyncpa [#allocation6], 0 }
   0x2   :  { %13 = vsyncpa [#allocation9], 0 }
   0x3   :  { %14 = vsyncpa [#allocation4], 0  ;;  %s863_s21 = smov [#allocation5]   ;;  %s745_s25 = scalar_lea.hbm %s1001_s1, 2048 }
   0x4   :  { %s30_s22 = sshll.u32 %s863_s21, 4  ;;  %p746_p0 = scmp.ne.s32.totalorder %s1001_s1, %s745_s25  ;;  %s31_s22 = int_to_ptr.vmem [resolvable:$true] %s30_s22 }
   0x5   :  { %p749_p1 = scmp.lt.u32.totalorder %s745_s25, %s1001_s1 }
   0x7   :  { %p751_p2 = pnand %p749_p1, %p746_p0 }
   0x9   :  { %754 = shalt.err (!%p751_p2)
}
   0xa   :  { %s755_s30 = scalar_lea.vmem %s31_s22, 2048  ;;  %p760_p4 = scmp.lt.s32.totalorder %s31_s22, %s31_s22 }
   0xb   :  { %p756_p3 = scmp.ne.s32.totalorder %s31_s22, %s755_s30  ;;  %p761_p5 = scmp.lt.s32.totalorder %s755_s30, %s755_s30 }
   0xd   :  { %p762_p6 = por %p761_p5, %p760_p4 }
   0xf   :  { %p763_p7 = pnand %p762_p6, %p756_p3 }
  0x11   :  { %766 = shalt.err (!%p763_p7)
}
  0x12   :  { %s864_s7 = smov 128   ;;  %s865_s8 = smov 8  }
  0x13   :  { %36 = dma.hbm_to_vmem [thread:$0]  %s1001_s1, 2048, %s31_s22, [#allocation6], %s864_s7, %s864_s7, %s865_s8  }
  0x14   :  { %s866_s11 = smov [#allocation2]   ;;  %s867_s13 = smov [#allocation7]  }
  0x15   :  { %s21_s12 = sshll.u32 %s866_s11, 4  ;;  %s42_s14 = sshll.u32 %s867_s13, 4  ;;  %s22_s12 = int_to_ptr.vmem [resolvable:$true] %s21_s12  ;;  %s43_s14 = int_to_ptr.vmem [resolvable:$true] %s42_s14 }
  0x16   :  { %s767_s17 = scalar_lea.hbm %s1000_s0, 64 }
  0x17   :  { %p768_p8 = scmp.ne.s32.totalorder %s1000_s0, %s767_s17  ;;  %p771_p9 = scmp.lt.u32.totalorder %s767_s17, %s1000_s0 }
  0x19   :  { %p773_p10 = pnand %p771_p9, %p768_p8 }
  0x1b   :  { %776 = shalt.err (!%p773_p10)
}
  0x1c   :  { %s777_s1 = scalar_lea.vmem %s22_s12, 64  ;;  %p782_p12 = scmp.lt.s32.totalorder %s22_s12, %s22_s12 }
  0x1d   :  { %p778_p11 = scmp.ne.s32.totalorder %s22_s12, %s777_s1  ;;  %p783_p13 = scmp.lt.s32.totalorder %s777_s1, %s777_s1 }
  0x1f   :  { %p784_p0 = por %p783_p13, %p782_p12 }
  0x21   :  { %p785_p1 = pnand %p784_p0, %p778_p11 }
  0x23   :  { %788 = shalt.err (!%p785_p1)
}
  0x24   :  { %24 = dma.hbm_to_vmem [thread:$0]  %s1000_s0, 64, %s22_s12, [#allocation3]  }
  0x25   :  { %s789_s26 = scalar_lea.hbm %s1002_s2, 1024 }
  0x26   :  { %p790_p2 = scmp.ne.s32.totalorder %s1002_s2, %s789_s26  ;;  %p793_p3 = scmp.lt.u32.totalorder %s789_s26, %s1002_s2 }
  0x28   :  { %p795_p4 = pnand %p793_p3, %p790_p2 }
  0x2a   :  { %798 = shalt.err (!%p795_p4)
}
  0x2b   :  { %s799_s7 = scalar_lea.vmem %s43_s14, 1024  ;;  %p804_p6 = scmp.lt.s32.totalorder %s43_s14, %s43_s14 }
  0x2c   :  { %p800_p5 = scmp.ne.s32.totalorder %s43_s14, %s799_s7  ;;  %p805_p7 = scmp.lt.s32.totalorder %s799_s7, %s799_s7 }
  0x2e   :  { %p806_p8 = por %p805_p7, %p804_p6 }
  0x30   :  { %p807_p9 = pnand %p806_p8, %p800_p5 }
  0x32   :  { %810 = shalt.err (!%p807_p9)
}
  0x33   :  { %s868_s0 = smov 64   ;;  %s869_s8 = smov 4  }
  0x34   :  { %48 = dma.hbm_to_vmem [thread:$0]  %s1002_s2, 1024, %s43_s14, [#allocation6], %s868_s0, %s868_s0, %s869_s8  }
  0x35   :  { %s870_s11 = smov [#allocation8]   ;;  %s811_s16 = scalar_lea.hbm %s1004_s4, 1024 }
  0x36   :  { %s56_s12 = sshll.u32 %s870_s11, 4  ;;  %p812_p10 = scmp.ne.s32.totalorder %s1004_s4, %s811_s16  ;;  %s57_s12 = int_to_ptr.vmem [resolvable:$true] %s56_s12 }
  0x37   :  { %p815_p11 = scmp.lt.u32.totalorder %s811_s16, %s1004_s4 }
  0x39   :  { %p817_p12 = pnand %p815_p11, %p812_p10 }
  0x3b   :  { %820 = shalt.err (!%p817_p12)
}
  0x3c   :  { %s821_s21 = scalar_lea.vmem %s57_s12, 1024  ;;  %p826_p0 = scmp.lt.s32.totalorder %s57_s12, %s57_s12 }
  0x3d   :  { %p822_p13 = scmp.ne.s32.totalorder %s57_s12, %s821_s21  ;;  %p827_p1 = scmp.lt.s32.totalorder %s821_s21, %s821_s21 }
  0x3f   :  { %p828_p2 = por %p827_p1, %p826_p0 }
  0x41   :  { %p829_p3 = pnand %p828_p2, %p822_p13 }
  0x43   :  { %832 = shalt.err (!%p829_p3)
}
  0x44   :  { %62 = dma.hbm_to_vmem [thread:$0]  %s1004_s4, 1024, %s57_s12, [#allocation9], %s868_s0, %s868_s0, %s869_s8  }
  0x45   :  { %855 = dma.done.wait [#allocation3], 64  }
  0x46   :  { %856 = vsyncadd [#allocation3], 4294967232 }
  0x47   :  { %857 = dma.done.wait [#allocation6], 3072  }
  0x48   :  { %858 = vsyncadd [#allocation6], 4294964224 }
  0x49   :  { %859 = dma.done.wait [#allocation9], 1024  }
  0x4a   :  { %860 = vsyncadd [#allocation9], 4294966272  ;;  %v871_v0 = vmov 0.0|0.0   ;;  %vm872_vm0 = vmmov 0   ;;  %v873_v1 = vmov 0.0   ;;  %v79_v2 = vld [vmem:[#allocation5] sm:$0xff] }
  0x4b   :  { %667 = vmatprep.subr.bf16.mxu0 %v871_v0  ;;  %589 = vmatprep.mubr.msk.f32.mxu0 %vm872_vm0, %v873_v1  ;;  %v80_v3 = vld [vmem:[#allocation5 + $0x8] sm:$0xff]  ;;  %v81_v4 = vld [vmem:[#allocation5 + $0x10] sm:$0xff]  ;;  %v82_v6 = vld [vmem:[#allocation5 + $0x18] sm:$0xff]  ;;  %s874_s24 = smov [#allocation10]  }
  0x4c   :  { %691 = vmatprep.subr.bf16.mxu1 %v871_v0  ;;  %624 = vmatprep.mubr.msk.f32.mxu1 %vm872_vm0, %v873_v1  ;;  %v668_v5 = vpack.c.bf16 %v80_v3, %v79_v2  ;;  %v671_v7 = vpack.c.bf16 %v82_v6, %v81_v4  ;;  %v83_v8 = vld [vmem:[#allocation5 + $0x20] sm:$0xff]  ;;  %v84_v9 = vld [vmem:[#allocation5 + $0x28] sm:$0xff]  ;;  %v85_v10 = vld [vmem:[#allocation5 + $0x30] sm:$0xff]  ;;  %s476_s25 = sshll.u32 %s874_s24, 4  ;;  %s477_s25 = int_to_ptr.vmem [resolvable:$true] %s476_s25 }
  0x4d   :  { %v86_v11 = vld [vmem:[#allocation5 + $0x38] sm:$0xff]  ;;  %v674_v12 = vpack.c.bf16 %v84_v9, %v83_v8  ;;  %v87_v13 = vld [vmem:[#allocation5 + $0x40] sm:$0xff]  ;;  %v88_v14 = vld [vmem:[#allocation5 + $0x48] sm:$0xff]  ;;  %p838_p5 = scmp.lt.s32.totalorder %s477_s25, %s477_s25 }
  0x4e   :  { %669 = vmatpush3.bf16.msra.mxu0 %v668_v5  ;;  %693 = vmatpush3.bf16.msra.mxu1 %v668_v5  ;;  %v677_v15 = vpack.c.bf16 %v86_v11, %v85_v10  ;;  %v680_v16 = vpack.c.bf16 %v88_v14, %v87_v13  ;;  %v89_v17 = vld [vmem:[#allocation5 + $0x50] sm:$0xff]  ;;  %v90_v18 = vld [vmem:[#allocation5 + $0x58] sm:$0xff]  ;;  %v91_v20 = vld [vmem:[#allocation5 + $0x60] sm:$0xff] }
  0x4f   :  { %670 = vmatprep.subr.bf16.mxu0 %v871_v0  ;;  %694 = vmatprep.subr.bf16.mxu1 %v871_v0  ;;  %v683_v19 = vpack.c.bf16 %v90_v18, %v89_v17  ;;  %v92_v21 = vld [vmem:[#allocation5 + $0x68] sm:$0xff]  ;;  %v93_v23 = vld [vmem:[#allocation5 + $0x70] sm:$0xff]  ;;  %v94_v24 = vld [vmem:[#allocation5 + $0x78] sm:$0xff] }
  0x50   :  { %v686_v22 = vpack.c.bf16 %v92_v21, %v91_v20  ;;  %v689_v25 = vpack.c.bf16 %v94_v24, %v93_v23  ;;  %v78_v26 = vld [vmem:[#allocation2] sm:$0xf]  ;;  %v727_v27 = vld [vmem:[#allocation7] sm:$0xff]   ;;  %v728_v28 = vld [vmem:[#allocation7 + $0x8] sm:$0xff]  }
  0x51   :  { %v729_v29 = vld [vmem:[#allocation7 + $0x10] sm:$0xff]   ;;  %v730_v30 = vld [vmem:[#allocation7 + $0x18] sm:$0xff]   ;;  %v731_v35 = vld [vmem:[#allocation7 + $0x20] sm:$0xff]  }
  0x52   :  { %672 = vmatpush3.bf16.msra.mxu0 %v671_v7  ;;  %696 = vmatpush3.bf16.msra.mxu1 %v671_v7  ;;  %v732_v36 = vld [vmem:[#allocation7 + $0x28] sm:$0xff]   ;;  %v733_v37 = vld [vmem:[#allocation7 + $0x30] sm:$0xff]   ;;  %v734_v38 = vld [vmem:[#allocation7 + $0x38] sm:$0xff]  }
  0x53   :  { %673 = vmatprep.subr.bf16.mxu0 %v871_v0  ;;  %697 = vmatprep.subr.bf16.mxu1 %v871_v0  ;;  %v735_v39 = vld [vmem:[#allocation8] sm:$0xff]   ;;  %v736_v40 = vld [vmem:[#allocation8 + $0x8] sm:$0xff]   ;;  %v737_v41 = vld [vmem:[#allocation8 + $0x10] sm:$0xff]  }
  0x54   :  { %v738_v42 = vld [vmem:[#allocation8 + $0x18] sm:$0xff]   ;;  %v739_v43 = vld [vmem:[#allocation8 + $0x20] sm:$0xff]   ;;  %v740_v44 = vld [vmem:[#allocation8 + $0x28] sm:$0xff]  }
  0x55   :  { %v741_v51 = vld [vmem:[#allocation8 + $0x30] sm:$0xff]   ;;  %v742_v52 = vld [vmem:[#allocation8 + $0x38] sm:$0xff]  }
  0x56   :  { %675 = vmatpush3.bf16.msra.mxu0 %v674_v12  ;;  %699 = vmatpush3.bf16.msra.mxu1 %v674_v12  ;;  %v487_v53 = vld [vmem:[%s1003_s3] ss:$0 sm:$0xff]  ;;  %s833_s3 = scalar_lea.vmem %s477_s25, 64 }
  0x57   :  { %676 = vmatprep.subr.bf16.mxu0 %v871_v0  ;;  %700 = vmatprep.subr.bf16.mxu1 %v871_v0  ;;  %v496_v62 = vld [vmem:[%s1005_s5] ss:$0 sm:$0xff]  ;;  %p834_p4 = scmp.ne.s32.totalorder %s477_s25, %s833_s3  ;;  %p839_p6 = scmp.lt.s32.totalorder %s833_s3, %s833_s3 }
  0x59   :  { %p840_p7 = por %p839_p6, %p838_p5 }
  0x5a   :  { %678 = vmatpush3.bf16.msra.mxu0 %v677_v15  ;;  %702 = vmatpush3.bf16.msra.mxu1 %v677_v15 }
  0x5b   :  { %679 = vmatprep.subr.bf16.mxu0 %v871_v0  ;;  %703 = vmatprep.subr.bf16.mxu1 %v871_v0  ;;  %p841_p8 = pnand %p840_p7, %p834_p4 }
  0x5e   :  { %681 = vmatpush3.bf16.msra.mxu0 %v680_v16  ;;  %705 = vmatpush3.bf16.msra.mxu1 %v680_v16 }
  0x5f   :  { %682 = vmatprep.subr.bf16.mxu0 %v871_v0  ;;  %706 = vmatprep.subr.bf16.mxu1 %v871_v0 }
  0x62   :  { %684 = vmatpush3.bf16.msra.mxu0 %v683_v19  ;;  %708 = vmatpush3.bf16.msra.mxu1 %v683_v19 }
  0x63   :  { %685 = vmatprep.subr.bf16.mxu0 %v871_v0  ;;  %709 = vmatprep.subr.bf16.mxu1 %v871_v0 }
  0x66   :  { %687 = vmatpush3.bf16.msra.mxu0 %v686_v22  ;;  %711 = vmatpush3.bf16.msra.mxu1 %v686_v22 }
  0x67   :  { %688 = vmatprep.subr.bf16.mxu0 %v871_v0  ;;  %712 = vmatprep.subr.bf16.mxu1 %v871_v0 }
  0x6a   :  { %690 = vmatpush3.bf16.msra.mxu0 %v689_v25  ;;  %714 = vmatpush3.bf16.msra.mxu1 %v689_v25 }
  0x6b   :  { %627 = vmatprep.subr.bf16.mxu0 %v873_v1  ;;  %647 = vmatprep.subr.bf16.mxu1 %v873_v1 }
  0x6d   :  { %590 = vmatmul.mubr.f32.vlgmr.msra.gmra.mrb[0].mxu0 %v78_v26 }
  0x6e   :  { %643 = vmatprep.mubr.msk.bf16.mxu0 %vm872_vm0, %v873_v1  ;;  %628 = vmatpush3.bf16.msra.mxu0 %v727_v27 }
  0x6f   :  { %629 = vmatprep.subr.bf16.mxu0 %v873_v1 }
  0x72   :  { %630 = vmatpush3.bf16.msra.mxu0 %v728_v28 }
  0x73   :  { %631 = vmatprep.subr.bf16.mxu0 %v873_v1 }
  0x76   :  { %632 = vmatpush3.bf16.msra.mxu0 %v729_v29 }
  0x77   :  { %633 = vmatprep.subr.bf16.mxu0 %v873_v1 }
  0x7a   :  { %634 = vmatpush3.bf16.msra.mxu0 %v730_v30 }
  0x7b   :  { %635 = vmatprep.subr.bf16.mxu0 %v873_v1 }
  0x7e   :  { %636 = vmatpush3.bf16.msra.mxu0 %v731_v35 }
  0x7f   :  { %637 = vmatprep.subr.bf16.mxu0 %v873_v1 }
  0x82   :  { %638 = vmatpush3.bf16.msra.mxu0 %v732_v36 }
  0x83   :  { %639 = vmatprep.subr.bf16.mxu0 %v873_v1 }
  0x86   :  { %640 = vmatpush3.bf16.msra.mxu0 %v733_v37 }
  0x87   :  { %641 = vmatprep.subr.bf16.mxu0 %v873_v1 }
  0x8a   :  { %642 = vmatpush3.bf16.msra.mxu0 %v734_v38 }
 0x140   :  { %v161_v31 = vpop.f32.mrb[0].mxu0 }
 0x141   :  { %v165_v32 = vsub.f32 %v78_v26, %v161_v31  ;;  %v591_v33 = vpop.f32.mrb[1].mxu0 }
 0x143   :  { %v166_v34 = vmul.f32 %v165_v32, %v165_v32 }
 0x145   :  { %625 = vmatmul.mubr.f32.vlgmr.msra.gmra.mrb[0].mxu1 %v166_v34 }
 0x146   :  { %663 = vmatprep.mubr.msk.bf16.mxu1 %vm872_vm0, %v873_v1  ;;  %648 = vmatpush3.bf16.msra.mxu1 %v735_v39 }
 0x147   :  { %649 = vmatprep.subr.bf16.mxu1 %v873_v1 }
 0x14a   :  { %650 = vmatpush3.bf16.msra.mxu1 %v736_v40 }
 0x14b   :  { %651 = vmatprep.subr.bf16.mxu1 %v873_v1 }
 0x14e   :  { %652 = vmatpush3.bf16.msra.mxu1 %v737_v41 }
 0x14f   :  { %653 = vmatprep.subr.bf16.mxu1 %v873_v1 }
 0x152   :  { %654 = vmatpush3.bf16.msra.mxu1 %v738_v42 }
 0x153   :  { %655 = vmatprep.subr.bf16.mxu1 %v873_v1 }
 0x156   :  { %656 = vmatpush3.bf16.msra.mxu1 %v739_v43 }
 0x157   :  { %657 = vmatprep.subr.bf16.mxu1 %v873_v1 }
 0x15a   :  { %658 = vmatpush3.bf16.msra.mxu1 %v740_v44 }
 0x15b   :  { %659 = vmatprep.subr.bf16.mxu1 %v873_v1 }
 0x15e   :  { %660 = vmatpush3.bf16.msra.mxu1 %v741_v51 }
 0x15f   :  { %661 = vmatprep.subr.bf16.mxu1 %v873_v1 }
 0x162   :  { %662 = vmatpush3.bf16.msra.mxu1 %v742_v52 }
 0x218   :  { %v233_v45 = vpop.f32.mrb[0].mxu1 }
 0x219   :  { %v234_v46 = vadd.f32 1e-05, %v233_v45  ;;  %v626_v47 = vpop.f32.mrb[1].mxu1 }
 0x21b   :  { %743 = vrsqrt.f32 %v234_v46 }
 0x225   :  { %v744_v48 = vpop.eup %743 }
 0x226   :  { %v238_v49 = vmul.f32 %v744_v48, %v165_v32 }
 0x228   :  { %v239_v50 = vpack.c.bf16 %v238_v49, %v238_v49 }
 0x22a   :  { %644 = vmatmul.mubr.bf16.vlgmr.msra.gmra.mrb[4].mxu0 %v239_v50 }
 0x2fd   :  { %v345_v54 = vpop.f32.mrb[4].mxu0 }
 0x2fe   :  { %v346_v55 = vadd.f32 %v487_v53, %v345_v54  ;;  %v645_v56 = vpop.f32.mrb[5].mxu0 }
 0x2ff   :  { %v348_v57 = vpop.f32.mrb[6].mxu0 }
 0x300   :  { %vm351_vm1 = vcmp.ge.f32.partialorder %v346_v55, 0.0  ;;  %v352_v58 = vmul.f32 0.2, %v346_v55  ;;  %v646_v59 = vpop.f32.mrb[7].mxu0 }
 0x302   :  { %v353_v60 = vsel %vm351_vm1, %v346_v55, %v352_v58 }
 0x303   :  { %v354_v61 = vpack.c.bf16 %v353_v60, %v353_v60 }
 0x305   :  { %664 = vmatmul.mubr.bf16.vlgmr.msra.gmra.mrb[4].mxu1 %v354_v61 }
 0x3d8   :  { %v460_v63 = vpop.f32.mrb[4].mxu1 }
 0x3d9   :  { %v461_v0 = vadd.f32 %v496_v62, %v460_v63  ;;  %v665_v1 = vpop.f32.mrb[5].mxu1 }
 0x3da   :  { %v463_v2 = vpop.f32.mrb[6].mxu1 }
 0x3db   :  { %v467_v3 = vmul.f32 0.2, %v461_v0  ;;  %v666_v4 = vpop.f32.mrb[7].mxu1  ;;  %vm466_vm2 = vcmp.ge.f32.partialorder %v461_v0, 0.0 }
 0x3dd   :  { %v468_v5 = vsel %vm466_vm2, %v461_v0, %v467_v3 }
 0x3de   :  { %469 = vst [vmem:[#allocation10] sm:$0xf] %v468_v5 }
 0x3df   :  { %844 = shalt.err (!%p841_p8)
}
 0x3e0   :  { %s845_s27 = scalar_lea.hbm %s1006_s6, 64 }
 0x3e1   :  { %p846_p9 = scmp.ne.s32.totalorder %s1006_s6, %s845_s27  ;;  %p849_p10 = scmp.lt.u32.totalorder %s845_s27, %s1006_s6 }
 0x3e3   :  { %p851_p11 = pnand %p849_p10, %p846_p9 }
 0x3e5   :  { %854 = shalt.err (!%p851_p11)
}
 0x3e6   :  { %479 = dma.vmem_to_hbm [thread:$0]  %s477_s25, 64, %s1006_s6, [#allocation4]  }
 0x3e7   :  { %861 = dma.done.wait [#allocation4], 64  }
 0x3e8   :  { %862 = vsyncadd [#allocation4], 4294967232 }
 0x3e9   :  { %483 = vsyncpa [#allocation3], 1 }
 0x3ea   :  { %484 = vsyncpa [#allocation6], 1 }
 0x3eb   :  { %485 = vsyncpa [#allocation9], 1 }
 0x3ec   :  { %486 = vsyncpa [#allocation4], 1 }

</bundles_post_ra>
